<compile_context>
chip_gen: v7x
topology: tpu7x:2x2x1
jax: 0.10.0
libtpu: 0.0.40
codegen_flags: <defaults>
</compile_context>

<pallas_src>
import functools
import math

import jax
import jax.numpy as jnp
from jax import lax
from jax.experimental import pallas as pl
from jax.experimental.pallas import tpu as pltpu


# ----------------------------- fused Pallas kernel ------------------------------

def _fused_cdc_kernel(x_ref, w1_ref, b1_ref, mw_ref, b2_ref, w3_ref, b3_ref, o_ref,
                      *, group, k, pad, dilation, W, L):
    x = x_ref[0].astype(jnp.float32)          # (C_in, L)   spatial(+batch) on lanes

    def grouped_pointwise(inp, w):
        # w: (Cout, Cin//group), BN-scale & (1-theta) already folded in.
        # Tiny channel counts -> unrolled VPU rank-1 MACs, no MXU, no dense group expansion.
        cout, cin_g = w.shape
        cout_g = cout // group
        parts = []
        for g in range(group):
            acc = None
            for cl in range(cin_g):
                term = (w[g * cout_g:(g + 1) * cout_g, cl:cl + 1] *
                        inp[g * cin_g + cl:g * cin_g + cl + 1, :])
                acc = term if acc is None else acc + term
            parts.append(acc)
        return parts[0] if group == 1 else jnp.concatenate(parts, axis=0)

    # ---- stage 1: 1x1 CDC conv (theta & BN scale folded) + shift + ReLU ----
    y = grouped_pointwise(x, w1_ref[...].astype(jnp.float32))
    y = jnp.maximum(y + b1_ref[...], 0.0)                  # (Chid, L)

    # ---- stage 2: depthwise kxk CDC conv via circular lane roll (XLU) * (mask*weight)
    # mw_ref[t] already contains mask(t) * wdw[:, t] (weight has CDC centre-tap fold and
    # BN scale folded in), so each tap is one VALU multiply + one add.
    acc = None
    for u in range(k):
        du = u * dilation - pad
        for v in range(k):
            dv = v * dilation - pad
            t = u * k + v
            s = du * W + dv                               # flat-spatial source offset
            tap = y if s == 0 else pltpu.roll(y, (-s) % L, 1)
            term = tap * mw_ref[t]                        # (Chid, L) load per tap (low vreg pressure)
            acc = term if acc is None else acc + term
    y2 = jnp.maximum(acc + b2_ref[...], 0.0)              # (Chid, L)

    # ---- stage 3: 1x1 CDC conv + BN (no ReLU) ----
    z = grouped_pointwise(y2, w3_ref[...].astype(jnp.float32)) + b3_ref[...]
    o_ref[0] = z.astype(o_ref.dtype)


# ------------------------------ trace-time folding (tiny arrays) ------------------------------

def _bn_scale_shift(p, eps=1e-5):
    scale = p["gamma"] / jnp.sqrt(p["rv"] + eps)
    shift = p["beta"] - p["rm"] * scale
    return scale, shift


def _fold_pointwise(w_pt, bn, theta):
    # w_pt: (Cout, Cin//group, 1, 1).  For a 1x1 Conv2d_cd, kernel_diff == kernel, so
    # out = (1-theta)*conv(x); fold (1-theta) and the BN scale into the weight.
    scale, shift = _bn_scale_shift(bn)
    w = w_pt[:, :, 0, 0] * ((1.0 - theta) * scale)[:, None]
    return w.astype(jnp.float32), shift.reshape(-1, 1).astype(jnp.float32)


def _fold_depthwise(w_dw, bn, theta, k):
    # w_dw: (C, 1, k, k).  CDC term (theta * sum(kernel) * centre pixel) is folded into
    # the centre tap (valid for odd k); BN scale is folded into all taps.
    scale, shift = _bn_scale_shift(bn)
    C = w_dw.shape[0]
    w = w_dw[:, 0, :, :].reshape(C, k * k)
    kdiff = jnp.sum(w, axis=1)
    center = ((k - 1) // 2) * k + ((k - 1) // 2)
    w = w.at[:, center].add(-theta * kdiff)
    w = w * scale[:, None]
    return w.astype(jnp.float32), shift.reshape(-1, 1).astype(jnp.float32)


def _make_tap_mask_weights(wdw, H, W, k, pad, dilation, G):
    # Per tap (du, dv): {0,1} mask over the flattened H*W axis marking output pixels whose
    # shifted source lies inside the image (handles zero padding, flat-shift row wrap and
    # cross-image wrap of the circular roll).  Tiled over the G images sharing the lane
    # axis, then pre-multiplied by the per-channel depthwise weight.
    M = H * W
    idx = jnp.arange(M, dtype=jnp.int32)
    row, col = idx // W, idx % W
    masks = []
    for u in range(k):
        du = u * dilation - pad
        for v in range(k):
            dv = v * dilation - pad
            valid = ((row + du >= 0) & (row + du < H) &
                     (col + dv >= 0) & (col + dv < W))
            masks.append(valid.astype(jnp.float32))
    mask = jnp.stack(masks, axis=0)                        # (k*k, M)
    mask = jnp.tile(mask, (1, G))                          # (k*k, G*M)
    return (mask[:, None, :] * wdw.T[:, :, None]).astype(jnp.float32)   # (k*k, Chid, G*M)


def _pick_images_per_step(N, M, hidden, kk, lane_cap=4096, mask_budget_bytes=2 << 20):
    # Largest divisor of N such that the lane extent stays vreg-friendly (2K-8K lanes)
    # and the folded mask*weight stays small.  For the tiny test case this collapses the
    # whole batch into ONE grid step (single-TC chips pay ~0.35us per grid step).
    best = 1
    for g in range(1, N + 1):
        if N % g:
            continue
        if g * M > lane_cap or kk * hidden * g * M * 4 > mask_budget_bytes:
            break
        best = g
    return best


# ------------------------------ full forward ------------------------------

def cdc_conv_r2_forward(x_nchw, params, *, group, k, pad, dilation, stride, theta):
    assert stride == 1
    # The PyTorch module only type-checks (out_normal - theta*out_diff) for the depthwise
    # stage when it is 'same'-shaped, i.e. 2*pad == dilation*(k-1); we rely on that (and
    # odd k) to fold the CDC term into the centre tap.
    assert 2 * pad == dilation * (k - 1)
    assert k % 2 == 1

    N, C_in, H, W = x_nchw.shape
    hidden = params["w1"].shape[0]
    C_out = params["w3"].shape[0]
    assert C_in % group == 0 and hidden % group == 0 and C_out % group == 0
    M = H * W

    G = _pick_images_per_step(N, M, hidden, k * k)
    NG = N // G
    L = G * M

    w1, b1 = _fold_pointwise(params["w1"], params["bn1"], theta)
    wdw, b2 = _fold_depthwise(params["w_dw"], params["bn2"], theta, k)
    w3, b3 = _fold_pointwise(params["w3"], params["bn3"], theta)
    mw = _make_tap_mask_weights(wdw, H, W, k, pad, dilation, G)

    # Layout plumbing in the wrapper: put G images side-by-side on the lane axis.
    x_g = (x_nchw.reshape(NG, G, C_in, M)
                 .transpose(0, 2, 1, 3)
                 .reshape(NG, C_in, L))

    kern = functools.partial(_fused_cdc_kernel, group=group, k=k, pad=pad,
                             dilation=dilation, W=W, L=L)
    # NOTE: constant operands (weights, shifts, mask*weight) are tiny here; at large
    # H*W consider pipeline_mode=pl.Buffered(1) on them to halve their VMEM footprint.
    out = pl.pallas_call(
        kern,
        out_shape=jax.ShapeDtypeStruct((NG, C_out, L), x_nchw.dtype),
        grid=(NG,),
        in_specs=[
            pl.BlockSpec((1, C_in, L), lambda n: (n, 0, 0)),
            pl.BlockSpec((hidden, C_in // group), lambda n: (0, 0)),
            pl.BlockSpec((hidden, 1), lambda n: (0, 0)),
            pl.BlockSpec((k * k, hidden, L), lambda n: (0, 0, 0)),
            pl.BlockSpec((hidden, 1), lambda n: (0, 0)),
            pl.BlockSpec((C_out, hidden // group), lambda n: (0, 0)),
            pl.BlockSpec((C_out, 1), lambda n: (0, 0)),
        ],
        out_specs=pl.BlockSpec((1, C_out, L), lambda n: (n, 0, 0)),
        compiler_params=pltpu.CompilerParams(
            dimension_semantics=("parallel",),
            vmem_limit_bytes=32 * 1024 * 1024),
    )(x_g, w1, b1, mw, b2, w3, b3)

    out = (out.reshape(NG, C_out, G, M)
              .transpose(0, 2, 1, 3)
              .reshape(N, C_out, H, W))
    return out


# ------------------------------ parameter setup ------------------------------

def make_params(key, C_in, C_out, hidden, group, k):
    keys = jax.random.split(key, 16)

    def conv_w(kk, shape, fan_in):
        bound = 1.0 / math.sqrt(fan_in)
        return jax.random.uniform(kk, shape, jnp.float32, -bound, bound)

    def bn_params(k0, k1, k2, k3, C):
        return dict(
            gamma=1.0 + 0.1 * jax.random.normal(k0, (C,), jnp.float32),
            beta=0.1 * jax.random.normal(k1, (C,), jnp.float32),
            rm=0.1 * jax.random.normal(k2, (C,), jnp.float32),
            rv=0.5 + jnp.abs(jax.random.normal(k3, (C,), jnp.float32)),
        )

    return dict(
        w1=conv_w(keys[0], (hidden, C_in // group, 1, 1), C_in // group),
        w_dw=conv_w(keys[1], (hidden, 1, k, k), k * k),
        w3=conv_w(keys[2], (C_out, hidden // group, 1, 1), hidden // group),
        bn1=bn_params(keys[3], keys[4], keys[5], keys[6], hidden),
        bn2=bn_params(keys[7], keys[8], keys[9], keys[10], hidden),
        bn3=bn_params(keys[11], keys[12], keys[13], keys[14], C_out),
    )


# ------------------------------ pure-JAX reference (correctness check) ------------------------------

def ref_forward(x, params, *, group, k, pad, dilation, theta):
    dn = ("NCHW", "OIHW", "NCHW")
    prec = lax.Precision.HIGHEST

    def pw_cdc(x, w_pt, g):
        out_n = lax.conv_general_dilated(x, w_pt, (1, 1), "VALID", dimension_numbers=dn,
                                         feature_group_count=g, precision=prec)
        kd = jnp.sum(w_pt, axis=(2, 3))[:, :, None, None]
        out_d = lax.conv_general_dilated(x, kd, (1, 1), "VALID", dimension_numbers=dn,
                                         feature_group_count=g, precision=prec)
        return out_n - theta * out_d

    def dw_cdc(x, w_pt):
        C = w_pt.shape[0]
        out_n = lax.conv_general_dilated(x, w_pt, (1, 1), [(pad, pad), (pad, pad)],
                                         rhs_dilation=(dilation, dilation),
                                         dimension_numbers=dn, feature_group_count=C,
                                         precision=prec)
        kd = jnp.sum(w_pt, axis=(2, 3))[:, :, None, None]
        out_d = lax.conv_general_dilated(x, kd, (1, 1), "VALID", dimension_numbers=dn,
                                         feature_group_count=C, precision=prec)
        return out_n - theta * out_d

    def bn(x, p):
        s, b = _bn_scale_shift(p)
        return x * s.reshape(1, -1, 1, 1) + b.reshape(1, -1, 1, 1)

    y = jax.nn.relu(bn(pw_cdc(x, params["w1"], group), params["bn1"]))
    y = jax.nn.relu(bn(dw_cdc(y, params["w_dw"]), params["bn2"]))
    return bn(pw_cdc(y, params["w3"], group), params["bn3"])


# ------------------------------ main ------------------------------

if __name__ == "__main__":
    N, C_in, H, W = 2, 4, 16, 16
    C_out = 8
    stride, group, kernel_size, padding = 1, 1, 3, 1
    expand_ratio, dilation, theta = 2.0, 1, 0.7
    hidden = round(C_in * expand_ratio)

    key = jax.random.PRNGKey(0)
    kx, kp = jax.random.split(key)
    x = jax.random.normal(kx, (N, C_in, H, W), jnp.float32)
    params = make_params(kp, C_in, C_out, hidden, group, kernel_size)

    fwd = jax.jit(functools.partial(cdc_conv_r2_forward, group=group, k=kernel_size,
                                    pad=padding, dilation=dilation, stride=stride,
                                    theta=theta))
    out = fwd(x, params)
    out = jax.block_until_ready(out)
    assert out.shape == (N, C_out, H, W)

    ref = ref_forward(x, params, group=group, k=kernel_size, pad=padding,
                      dilation=dilation, theta=theta)
    err = float(jnp.max(jnp.abs(out - ref)))
    assert err < 1e-3, f"max abs err {err}"

    print("KERNEL_OK")
</pallas_src>

<mosaic_0001>
module attributes {stable_mosaic.version = 11 : i64} {
  func.func @_fused_cdc_kernel(%arg0: i32, %arg1: memref<1x4x512xf32, #tpu.memory_space<vmem>>, %arg2: memref<8x4xf32, #tpu.memory_space<vmem>>, %arg3: memref<8x1xf32, #tpu.memory_space<vmem>>, %arg4: memref<9x8x512xf32, #tpu.memory_space<vmem>>, %arg5: memref<8x1xf32, #tpu.memory_space<vmem>>, %arg6: memref<8x8xf32, #tpu.memory_space<vmem>>, %arg7: memref<8x1xf32, #tpu.memory_space<vmem>>, %arg8: memref<1x8x512xf32, #tpu.memory_space<vmem>>) attributes {dimension_semantics = [#tpu.dimension_semantics<parallel>], iteration_bounds = array<i64: 1>, scalar_prefetch = 0 : i64, scratch_operands = 0 : i64, tpu.core_type = #tpu.core_type<tc>, window_params = [{transform_indices = @transform_0, window_bounds = array<i64: 1, 4, 512>}, {pipeline_mode = #tpu.pipeline_mode<synchronous>, transform_indices = @transform_1, window_bounds = array<i64: 8, 4>}, {pipeline_mode = #tpu.pipeline_mode<synchronous>, transform_indices = @transform_2, window_bounds = array<i64: 8, 1>}, {pipeline_mode = #tpu.pipeline_mode<synchronous>, transform_indices = @transform_3, window_bounds = array<i64: 9, 8, 512>}, {pipeline_mode = #tpu.pipeline_mode<synchronous>, transform_indices = @transform_4, window_bounds = array<i64: 8, 1>}, {pipeline_mode = #tpu.pipeline_mode<synchronous>, transform_indices = @transform_5, window_bounds = array<i64: 8, 8>}, {pipeline_mode = #tpu.pipeline_mode<synchronous>, transform_indices = @transform_6, window_bounds = array<i64: 8, 1>}, {transform_indices = @transform_7, window_bounds = array<i64: 1, 8, 512>}]} {
    %c0 = arith.constant 0 : index
    %c0_0 = arith.constant 0 : index
    %c0_1 = arith.constant 0 : index
    %0 = vector.load %arg1[%c0, %c0_0, %c0_1] : memref<1x4x512xf32, #tpu.memory_space<vmem>>, vector<1x4x512xf32>
    %1 = vector.shape_cast %0 : vector<1x4x512xf32> to vector<4x512xf32>
    %c0_2 = arith.constant 0 : index
    %c0_3 = arith.constant 0 : index
    %2 = vector.load %arg2[%c0_2, %c0_3] : memref<8x4xf32, #tpu.memory_space<vmem>>, vector<8x4xf32>
    %3 = vector.extract_strided_slice %2 {offsets = [0, 0], sizes = [8, 1], strides = [1, 1]} : vector<8x4xf32> to vector<8x1xf32>
    %4 = vector.extract_strided_slice %1 {offsets = [0, 0], sizes = [1, 512], strides = [1, 1]} : vector<4x512xf32> to vector<1x512xf32>
    %5 = vector.broadcast %3 : vector<8x1xf32> to vector<8x512xf32>
    %6 = vector.broadcast %4 : vector<1x512xf32> to vector<8x512xf32>
    %7 = arith.mulf %5, %6 : vector<8x512xf32>
    %8 = vector.extract_strided_slice %2 {offsets = [0, 1], sizes = [8, 1], strides = [1, 1]} : vector<8x4xf32> to vector<8x1xf32>
    %9 = vector.extract_strided_slice %1 {offsets = [1, 0], sizes = [1, 512], strides = [1, 1]} : vector<4x512xf32> to vector<1x512xf32>
    %10 = vector.broadcast %8 : vector<8x1xf32> to vector<8x512xf32>
    %11 = vector.broadcast %9 : vector<1x512xf32> to vector<8x512xf32>
    %12 = arith.mulf %10, %11 : vector<8x512xf32>
    %13 = arith.addf %7, %12 : vector<8x512xf32>
    %14 = vector.extract_strided_slice %2 {offsets = [0, 2], sizes = [8, 1], strides = [1, 1]} : vector<8x4xf32> to vector<8x1xf32>
    %15 = vector.extract_strided_slice %1 {offsets = [2, 0], sizes = [1, 512], strides = [1, 1]} : vector<4x512xf32> to vector<1x512xf32>
    %16 = vector.broadcast %14 : vector<8x1xf32> to vector<8x512xf32>
    %17 = vector.broadcast %15 : vector<1x512xf32> to vector<8x512xf32>
    %18 = arith.mulf %16, %17 : vector<8x512xf32>
    %19 = arith.addf %13, %18 : vector<8x512xf32>
    %20 = vector.extract_strided_slice %2 {offsets = [0, 3], sizes = [8, 1], strides = [1, 1]} : vector<8x4xf32> to vector<8x1xf32>
    %21 = vector.extract_strided_slice %1 {offsets = [3, 0], sizes = [1, 512], strides = [1, 1]} : vector<4x512xf32> to vector<1x512xf32>
    %22 = vector.broadcast %20 : vector<8x1xf32> to vector<8x512xf32>
    %23 = vector.broadcast %21 : vector<1x512xf32> to vector<8x512xf32>
    %24 = arith.mulf %22, %23 : vector<8x512xf32>
    %25 = arith.addf %19, %24 : vector<8x512xf32>
    %c0_4 = arith.constant 0 : index
    %c0_5 = arith.constant 0 : index
    %26 = vector.load %arg3[%c0_4, %c0_5] : memref<8x1xf32, #tpu.memory_space<vmem>>, vector<8x1xf32>
    %27 = vector.broadcast %26 : vector<8x1xf32> to vector<8x512xf32>
    %28 = arith.addf %25, %27 : vector<8x512xf32>
    %cst = arith.constant 0.000000e+00 : f32
    %29 = vector.broadcast %cst : f32 to vector<8x512xf32>
    %30 = arith.maximumf %28, %29 : vector<8x512xf32>
    %c17_i32 = arith.constant 17 : i32
    %31 = tpu.dynamic_rotate %30 by %c17_i32 dim 1 : vector<8x512xf32>, i32 -> vector<8x512xf32>
    %c0_6 = arith.constant 0 : index
    %c0_7 = arith.constant 0 : index
    %c0_8 = arith.constant 0 : index
    %32 = vector.load %arg4[%c0_6, %c0_7, %c0_8] : memref<9x8x512xf32, #tpu.memory_space<vmem>>, vector<1x8x512xf32>
    %33 = vector.shape_cast %32 : vector<1x8x512xf32> to vector<8x512xf32>
    %34 = arith.mulf %31, %33 : vector<8x512xf32>
    %c16_i32 = arith.constant 16 : i32
    %35 = tpu.dynamic_rotate %30 by %c16_i32 dim 1 : vector<8x512xf32>, i32 -> vector<8x512xf32>
    %c1 = arith.constant 1 : index
    %c0_9 = arith.constant 0 : index
    %c0_10 = arith.constant 0 : index
    %36 = vector.load %arg4[%c1, %c0_9, %c0_10] : memref<9x8x512xf32, #tpu.memory_space<vmem>>, vector<1x8x512xf32>
    %37 = vector.shape_cast %36 : vector<1x8x512xf32> to vector<8x512xf32>
    %38 = arith.mulf %35, %37 : vector<8x512xf32>
    %39 = arith.addf %34, %38 : vector<8x512xf32>
    %c15_i32 = arith.constant 15 : i32
    %40 = tpu.dynamic_rotate %30 by %c15_i32 dim 1 : vector<8x512xf32>, i32 -> vector<8x512xf32>
    %c2 = arith.constant 2 : index
    %c0_11 = arith.constant 0 : index
    %c0_12 = arith.constant 0 : index
    %41 = vector.load %arg4[%c2, %c0_11, %c0_12] : memref<9x8x512xf32, #tpu.memory_space<vmem>>, vector<1x8x512xf32>
    %42 = vector.shape_cast %41 : vector<1x8x512xf32> to vector<8x512xf32>
    %43 = arith.mulf %40, %42 : vector<8x512xf32>
    %44 = arith.addf %39, %43 : vector<8x512xf32>
    %c1_i32 = arith.constant 1 : i32
    %45 = tpu.dynamic_rotate %30 by %c1_i32 dim 1 : vector<8x512xf32>, i32 -> vector<8x512xf32>
    %c3 = arith.constant 3 : index
    %c0_13 = arith.constant 0 : index
    %c0_14 = arith.constant 0 : index
    %46 = vector.load %arg4[%c3, %c0_13, %c0_14] : memref<9x8x512xf32, #tpu.memory_space<vmem>>, vector<1x8x512xf32>
    %47 = vector.shape_cast %46 : vector<1x8x512xf32> to vector<8x512xf32>
    %48 = arith.mulf %45, %47 : vector<8x512xf32>
    %49 = arith.addf %44, %48 : vector<8x512xf32>
    %c4 = arith.constant 4 : index
    %c0_15 = arith.constant 0 : index
    %c0_16 = arith.constant 0 : index
    %50 = vector.load %arg4[%c4, %c0_15, %c0_16] : memref<9x8x512xf32, #tpu.memory_space<vmem>>, vector<1x8x512xf32>
    %51 = vector.shape_cast %50 : vector<1x8x512xf32> to vector<8x512xf32>
    %52 = arith.mulf %30, %51 : vector<8x512xf32>
    %53 = arith.addf %49, %52 : vector<8x512xf32>
    %c511_i32 = arith.constant 511 : i32
    %54 = tpu.dynamic_rotate %30 by %c511_i32 dim 1 : vector<8x512xf32>, i32 -> vector<8x512xf32>
    %c5 = arith.constant 5 : index
    %c0_17 = arith.constant 0 : index
    %c0_18 = arith.constant 0 : index
    %55 = vector.load %arg4[%c5, %c0_17, %c0_18] : memref<9x8x512xf32, #tpu.memory_space<vmem>>, vector<1x8x512xf32>
    %56 = vector.shape_cast %55 : vector<1x8x512xf32> to vector<8x512xf32>
    %57 = arith.mulf %54, %56 : vector<8x512xf32>
    %58 = arith.addf %53, %57 : vector<8x512xf32>
    %c497_i32 = arith.constant 497 : i32
    %59 = tpu.dynamic_rotate %30 by %c497_i32 dim 1 : vector<8x512xf32>, i32 -> vector<8x512xf32>
    %c6 = arith.constant 6 : index
    %c0_19 = arith.constant 0 : index
    %c0_20 = arith.constant 0 : index
    %60 = vector.load %arg4[%c6, %c0_19, %c0_20] : memref<9x8x512xf32, #tpu.memory_space<vmem>>, vector<1x8x512xf32>
    %61 = vector.shape_cast %60 : vector<1x8x512xf32> to vector<8x512xf32>
    %62 = arith.mulf %59, %61 : vector<8x512xf32>
    %63 = arith.addf %58, %62 : vector<8x512xf32>
    %c496_i32 = arith.constant 496 : i32
    %64 = tpu.dynamic_rotate %30 by %c496_i32 dim 1 : vector<8x512xf32>, i32 -> vector<8x512xf32>
    %c7 = arith.constant 7 : index
    %c0_21 = arith.constant 0 : index
    %c0_22 = arith.constant 0 : index
    %65 = vector.load %arg4[%c7, %c0_21, %c0_22] : memref<9x8x512xf32, #tpu.memory_space<vmem>>, vector<1x8x512xf32>
    %66 = vector.shape_cast %65 : vector<1x8x512xf32> to vector<8x512xf32>
    %67 = arith.mulf %64, %66 : vector<8x512xf32>
    %68 = arith.addf %63, %67 : vector<8x512xf32>
    %c495_i32 = arith.constant 495 : i32
    %69 = tpu.dynamic_rotate %30 by %c495_i32 dim 1 : vector<8x512xf32>, i32 -> vector<8x512xf32>
    %c8 = arith.constant 8 : index
    %c0_23 = arith.constant 0 : index
    %c0_24 = arith.constant 0 : index
    %70 = vector.load %arg4[%c8, %c0_23, %c0_24] : memref<9x8x512xf32, #tpu.memory_space<vmem>>, vector<1x8x512xf32>
    %71 = vector.shape_cast %70 : vector<1x8x512xf32> to vector<8x512xf32>
    %72 = arith.mulf %69, %71 : vector<8x512xf32>
    %73 = arith.addf %68, %72 : vector<8x512xf32>
    %c0_25 = arith.constant 0 : index
    %c0_26 = arith.constant 0 : index
    %74 = vector.load %arg5[%c0_25, %c0_26] : memref<8x1xf32, #tpu.memory_space<vmem>>, vector<8x1xf32>
    %75 = vector.broadcast %74 : vector<8x1xf32> to vector<8x512xf32>
    %76 = arith.addf %73, %75 : vector<8x512xf32>
    %cst_27 = arith.constant 0.000000e+00 : f32
    %77 = vector.broadcast %cst_27 : f32 to vector<8x512xf32>
    %78 = arith.maximumf %76, %77 : vector<8x512xf32>
    %c0_28 = arith.constant 0 : index
    %c0_29 = arith.constant 0 : index
    %79 = vector.load %arg6[%c0_28, %c0_29] : memref<8x8xf32, #tpu.memory_space<vmem>>, vector<8x8xf32>
    %80 = vector.extract_strided_slice %79 {offsets = [0, 0], sizes = [8, 1], strides = [1, 1]} : vector<8x8xf32> to vector<8x1xf32>
    %81 = vector.extract_strided_slice %78 {offsets = [0, 0], sizes = [1, 512], strides = [1, 1]} : vector<8x512xf32> to vector<1x512xf32>
    %82 = vector.broadcast %80 : vector<8x1xf32> to vector<8x512xf32>
    %83 = vector.broadcast %81 : vector<1x512xf32> to vector<8x512xf32>
    %84 = arith.mulf %82, %83 : vector<8x512xf32>
    %85 = vector.extract_strided_slice %79 {offsets = [0, 1], sizes = [8, 1], strides = [1, 1]} : vector<8x8xf32> to vector<8x1xf32>
    %86 = vector.extract_strided_slice %78 {offsets = [1, 0], sizes = [1, 512], strides = [1, 1]} : vector<8x512xf32> to vector<1x512xf32>
    %87 = vector.broadcast %85 : vector<8x1xf32> to vector<8x512xf32>
    %88 = vector.broadcast %86 : vector<1x512xf32> to vector<8x512xf32>
    %89 = arith.mulf %87, %88 : vector<8x512xf32>
    %90 = arith.addf %84, %89 : vector<8x512xf32>
    %91 = vector.extract_strided_slice %79 {offsets = [0, 2], sizes = [8, 1], strides = [1, 1]} : vector<8x8xf32> to vector<8x1xf32>
    %92 = vector.extract_strided_slice %78 {offsets = [2, 0], sizes = [1, 512], strides = [1, 1]} : vector<8x512xf32> to vector<1x512xf32>
    %93 = vector.broadcast %91 : vector<8x1xf32> to vector<8x512xf32>
    %94 = vector.broadcast %92 : vector<1x512xf32> to vector<8x512xf32>
    %95 = arith.mulf %93, %94 : vector<8x512xf32>
    %96 = arith.addf %90, %95 : vector<8x512xf32>
    %97 = vector.extract_strided_slice %79 {offsets = [0, 3], sizes = [8, 1], strides = [1, 1]} : vector<8x8xf32> to vector<8x1xf32>
    %98 = vector.extract_strided_slice %78 {offsets = [3, 0], sizes = [1, 512], strides = [1, 1]} : vector<8x512xf32> to vector<1x512xf32>
    %99 = vector.broadcast %97 : vector<8x1xf32> to vector<8x512xf32>
    %100 = vector.broadcast %98 : vector<1x512xf32> to vector<8x512xf32>
    %101 = arith.mulf %99, %100 : vector<8x512xf32>
    %102 = arith.addf %96, %101 : vector<8x512xf32>
    %103 = vector.extract_strided_slice %79 {offsets = [0, 4], sizes = [8, 1], strides = [1, 1]} : vector<8x8xf32> to vector<8x1xf32>
    %104 = vector.extract_strided_slice %78 {offsets = [4, 0], sizes = [1, 512], strides = [1, 1]} : vector<8x512xf32> to vector<1x512xf32>
    %105 = vector.broadcast %103 : vector<8x1xf32> to vector<8x512xf32>
    %106 = vector.broadcast %104 : vector<1x512xf32> to vector<8x512xf32>
    %107 = arith.mulf %105, %106 : vector<8x512xf32>
    %108 = arith.addf %102, %107 : vector<8x512xf32>
    %109 = vector.extract_strided_slice %79 {offsets = [0, 5], sizes = [8, 1], strides = [1, 1]} : vector<8x8xf32> to vector<8x1xf32>
    %110 = vector.extract_strided_slice %78 {offsets = [5, 0], sizes = [1, 512], strides = [1, 1]} : vector<8x512xf32> to vector<1x512xf32>
    %111 = vector.broadcast %109 : vector<8x1xf32> to vector<8x512xf32>
    %112 = vector.broadcast %110 : vector<1x512xf32> to vector<8x512xf32>
    %113 = arith.mulf %111, %112 : vector<8x512xf32>
    %114 = arith.addf %108, %113 : vector<8x512xf32>
    %115 = vector.extract_strided_slice %79 {offsets = [0, 6], sizes = [8, 1], strides = [1, 1]} : vector<8x8xf32> to vector<8x1xf32>
    %116 = vector.extract_strided_slice %78 {offsets = [6, 0], sizes = [1, 512], strides = [1, 1]} : vector<8x512xf32> to vector<1x512xf32>
    %117 = vector.broadcast %115 : vector<8x1xf32> to vector<8x512xf32>
    %118 = vector.broadcast %116 : vector<1x512xf32> to vector<8x512xf32>
    %119 = arith.mulf %117, %118 : vector<8x512xf32>
    %120 = arith.addf %114, %119 : vector<8x512xf32>
    %121 = vector.extract_strided_slice %79 {offsets = [0, 7], sizes = [8, 1], strides = [1, 1]} : vector<8x8xf32> to vector<8x1xf32>
    %122 = vector.extract_strided_slice %78 {offsets = [7, 0], sizes = [1, 512], strides = [1, 1]} : vector<8x512xf32> to vector<1x512xf32>
    %123 = vector.broadcast %121 : vector<8x1xf32> to vector<8x512xf32>
    %124 = vector.broadcast %122 : vector<1x512xf32> to vector<8x512xf32>
    %125 = arith.mulf %123, %124 : vector<8x512xf32>
    %126 = arith.addf %120, %125 : vector<8x512xf32>
    %c0_30 = arith.constant 0 : index
    %c0_31 = arith.constant 0 : index
    %127 = vector.load %arg7[%c0_30, %c0_31] : memref<8x1xf32, #tpu.memory_space<vmem>>, vector<8x1xf32>
    %128 = vector.broadcast %127 : vector<8x1xf32> to vector<8x512xf32>
    %129 = arith.addf %126, %128 : vector<8x512xf32>
    %c0_32 = arith.constant 0 : index
    %c0_33 = arith.constant 0 : index
    %c0_34 = arith.constant 0 : index
    %130 = vector.load %arg8[%c0_32, %c0_33, %c0_34] : memref<1x8x512xf32, #tpu.memory_space<vmem>>, vector<1x8x512xf32>
    %131 = vector.shape_cast %130 : vector<1x8x512xf32> to vector<8x512xf32>
    %132 = vector.shape_cast %129 : vector<8x512xf32> to vector<1x8x512xf32>
    tpu.vector_store %arg8[%c0_32, %c0_33, %c0_34], %132 {strides = array<i32>} : memref<1x8x512xf32, #tpu.memory_space<vmem>>, vector<1x8x512xf32>,
    return
  }
  func.func @transform_0(%arg0: i32) -> (i32, i32, i32) {
    %c0_i32 = arith.constant 0 : i32
    %c0_i32_0 = arith.constant 0 : i32
    %c0_i32_1 = arith.constant 0 : i32
    return %arg0, %c0_i32, %c0_i32_0 : i32, i32, i32
  }
  func.func @transform_1(%arg0: i32) -> (i32, i32) {
    %c0_i32 = arith.constant 0 : i32
    %c0_i32_0 = arith.constant 0 : i32
    %c0_i32_1 = arith.constant 0 : i32
    return %c0_i32, %c0_i32_0 : i32, i32
  }
  func.func @transform_2(%arg0: i32) -> (i32, i32) {
    %c0_i32 = arith.constant 0 : i32
    %c0_i32_0 = arith.constant 0 : i32
    %c0_i32_1 = arith.constant 0 : i32
    return %c0_i32, %c0_i32_0 : i32, i32
  }
  func.func @transform_3(%arg0: i32) -> (i32, i32, i32) {
    %c0_i32 = arith.constant 0 : i32
    %c0_i32_0 = arith.constant 0 : i32
    %c0_i32_1 = arith.constant 0 : i32
    %c0_i32_2 = arith.constant 0 : i32
    return %c0_i32, %c0_i32_0, %c0_i32_1 : i32, i32, i32
  }
  func.func @transform_4(%arg0: i32) -> (i32, i32) {
    %c0_i32 = arith.constant 0 : i32
    %c0_i32_0 = arith.constant 0 : i32
    %c0_i32_1 = arith.constant 0 : i32
    return %c0_i32, %c0_i32_0 : i32, i32
  }
  func.func @transform_5(%arg0: i32) -> (i32, i32) {
    %c0_i32 = arith.constant 0 : i32
    %c0_i32_0 = arith.constant 0 : i32
    %c0_i32_1 = arith.constant 0 : i32
    return %c0_i32, %c0_i32_0 : i32, i32
  }
  func.func @transform_6(%arg0: i32) -> (i32, i32) {
    %c0_i32 = arith.constant 0 : i32
    %c0_i32_0 = arith.constant 0 : i32
    %c0_i32_1 = arith.constant 0 : i32
    return %c0_i32, %c0_i32_0 : i32, i32
  }
  func.func @transform_7(%arg0: i32) -> (i32, i32, i32) {
    %c0_i32 = arith.constant 0 : i32
    %c0_i32_0 = arith.constant 0 : i32
    %c0_i32_1 = arith.constant 0 : i32
    return %arg0, %c0_i32, %c0_i32_0 : i32, i32, i32
  }
}

</mosaic_0001>

<bundles_post_ra>
// kernel: squeeze.4
= control target key start
LH: loop header
LB: loop body
LE: loop exit
PB: predicated region body
PF: predicated region fallthrough
CT: control target
= control target key end

     0   :  { %vm16_vm0 = vcmask 64512   ;;  %s61_s0 = inlined_call_operand.vmem [shape: f32[8,3,3], index: 0, kind: input, shape index: {}]   ;;  %s62_s1 = inlined_call_operand.vmem [shape: f32[8,9], index: 1, kind: output, shape index: {}]  }
   0x1   :  { %v29_v0 = vld [vmem:[%s61_s0 + $0x8] sm:$0xf]  ;;  %v30_v1 = vld [vmem:[%s61_s0 + $0x4] sm:$0xf]  ;;  %v13_v2 = vld [vmem:[%s61_s0] sm:$0xf] }
   0x2   :  { %8 = vst [vmem:[#allocation0 + $0x10] sm:$0xf] %v29_v0  ;;  %12 = vst [vmem:[#allocation0 + $0x8] sm:$0xf] %v30_v1 }
   0x3   :  { %14 = vst [vmem:[#allocation0] sm:$0xf] %v13_v2 }
   0x9   :  { %v19_v4 = vld [vmem:[#allocation0 + $0x8] sm:$0x7]   ;;  %v24_v5 = vld [vmem:[#allocation0 + $0x10] sm:$0x7]  }
   0xa   :  { %v15_v3 = vld [vmem:[#allocation0] sm:$0x7]   ;;  %31 = vst.msk [vmem:[%s62_s1 + $0x3] sm:$0x7] %vm16_vm0, %v19_v4   ;;  %32 = vst.msk [vmem:[%s62_s1 + $0x6] sm:$0x7] %vm16_vm0, %v24_v5  }
   0xb   :  { %17 = vst.msk [vmem:[%s62_s1] sm:$0x7] %vm16_vm0, %v15_v3  }

// kernel: cdc_conv_r2_forward.1
= control target key start
LH: loop header
LB: loop body
LE: loop exit
PB: predicated region body
PF: predicated region fallthrough
CT: control target
= control target key end

     0   :  { %v768_v0 = vmov 0   ;;  %v769_v2 = vmov 2   ;;  %v770_v3 = vmov 1   ;;  %v771_v4 = vmov 3   ;;  %s773_s9 = smov 16   ;;  %s774_s10 = smov 15   ;;  %s1269_s1 = inlined_call_operand.vmem [shape: f32[8,4], index: 1, kind: input, shape index: {}]   ;;  %s1270_s2 = inlined_call_operand.vmem [shape: f32[8,1], index: 2, kind: input, shape index: {}]   ;;  %s1271_s4 = inlined_call_operand.vmem [shape: f32[8,1], index: 4, kind: input, shape index: {}]   ;;  %s1272_s5 = inlined_call_operand.vmem [shape: f32[8,8], index: 5, kind: input, shape index: {}]   ;;  %s1273_s0 = inlined_call_operand.vmem [shape: f32[1,4,512], index: 0, kind: input, shape index: {}]   ;;  %s1274_s6 = inlined_call_operand.vmem [shape: f32[8,1], index: 6, kind: input, shape index: {}]   ;;  %s1275_s3 = inlined_call_operand.vmem [shape: f32[9,8,512], index: 3, kind: input, shape index: {}]   ;;  %s1276_s7 = inlined_call_operand.vmem [shape: f32[1,8,512], index: 7, kind: output, shape index: {}]  }
   0x1   :  { %754 = vset.pattern.permute.xlu0 %v768_v0  ;;  %v28_v1 = vld [vmem:[%s1269_s1] sm:$0xff]  ;;  %756 = vset.pattern.permute.xlu1 %v769_v2  ;;  %v36_v8 = vlaneseq  ;;  %v27_v13 = vld [vmem:[%s1273_s0 + $0x8] sm:$0xff]  ;;  %s775_s11 = smov 1   ;;  %s776_s12 = smov 127  }
   0x2   :  { %31 = vperm.xlu0 %754, %v28_v1   ;;  %125 = vperm.xlu1 %756, %v28_v1   ;;  %v220_v5 = vld [vmem:[%s1270_s2] sm:$0xff]  ;;  %s777_s13 = smov 113   ;;  %s778_s14 = smov 112  }
   0x3   :  { %v452_v6 = vld [vmem:[%s1271_s4] sm:$0xff]  ;;  %v37_v9 = vshrl.u32 %v36_v8, 7  ;;  %s779_s15 = smov 111  }
   0x4   :  { %v839_v7 = vld [vmem:[%s1272_s5] sm:$0xff] }
   0x5   :  { %v844_v10 = vsub.s32 0, %v37_v9  ;;  %v846_v11 = vsub.s32 4, %v37_v9  ;;  %v26_v12 = vld [vmem:[%s1273_s0] sm:$0xff]  ;;  %v854_v14 = vsub.s32 2, %v37_v9  ;;  %v856_v15 = vsub.s32 6, %v37_v9  ;;  %s772_s0 = smov 17  }
   0x6   :  { %755 = vset.pattern.permute.xlu0 %v770_v3  ;;  %757 = vset.pattern.permute.xlu1 %v771_v4  ;;  %v858_v16 = vsub.s32 1, %v37_v9  ;;  %v860_v17 = vsub.s32 5, %v37_v9  ;;  %v862_v18 = vsub.s32 3, %v37_v9  ;;  %v864_v19 = vsub.s32 7, %v37_v9 }
   0x7   :  { %77 = vperm.xlu0 %755, %v28_v1   ;;  %173 = vperm.xlu1 %757, %v28_v1   ;;  %v39_v20 = vrot.slane %v26_v12, %v844_v10  ;;  %v43_v21 = vrot.slane %v26_v12, %v846_v11  ;;  %v47_v22 = vrot.slane %v27_v13, %v844_v10 }
   0x8   :  { %v51_v23 = vrot.slane %v27_v13, %v846_v11  ;;  %v131_v24 = vrot.slane %v26_v12, %v854_v14  ;;  %v135_v25 = vrot.slane %v26_v12, %v856_v15  ;;  %v139_v26 = vrot.slane %v27_v13, %v854_v14 }
   0x9   :  { %v143_v27 = vrot.slane %v27_v13, %v856_v15  ;;  %v83_v28 = vrot.slane %v26_v12, %v858_v16  ;;  %v87_v29 = vrot.slane %v26_v12, %v860_v17  ;;  %v91_v30 = vrot.slane %v27_v13, %v858_v16 }
   0xa   :  { %v95_v31 = vrot.slane %v27_v13, %v860_v17  ;;  %v179_v32 = vrot.slane %v26_v12, %v862_v18  ;;  %v183_v33 = vrot.slane %v26_v12, %v864_v19  ;;  %v187_v34 = vrot.slane %v27_v13, %v862_v18 }
   0xb   :  { %758 = vset.pattern.permute.xlu1 %v768_v0  ;;  %759 = vset.pattern.permute.xlu0 %v768_v0  ;;  %v191_v35 = vrot.slane %v27_v13, %v864_v19  ;;  %v59_v37 = vrot.slane %v39_v20, %v844_v10  ;;  %v63_v38 = vrot.slane %v43_v21, %v844_v10 }
   0xc   :  { %223 = vperm.xlu1 %758, %v220_v5   ;;  %455 = vperm.xlu0 %759, %v452_v6   ;;  %v67_v39 = vrot.slane %v47_v22, %v844_v10  ;;  %v71_v40 = vrot.slane %v51_v23, %v844_v10  ;;  %v151_v42 = vrot.slane %v131_v24, %v854_v14 }
   0xd   :  { %v155_v43 = vrot.slane %v135_v25, %v854_v14  ;;  %v159_v44 = vrot.slane %v139_v26, %v854_v14  ;;  %v163_v45 = vrot.slane %v143_v27, %v854_v14  ;;  %v103_v46 = vrot.slane %v83_v28, %v858_v16 }
   0xe   :  { %v107_v47 = vrot.slane %v87_v29, %v858_v16  ;;  %v111_v48 = vrot.slane %v91_v30, %v858_v16  ;;  %v115_v49 = vrot.slane %v95_v31, %v858_v16  ;;  %v199_v50 = vrot.slane %v179_v32, %v862_v18 }
   0xf   :  { %v203_v51 = vrot.slane %v183_v33, %v862_v18  ;;  %v207_v52 = vrot.slane %v187_v34, %v862_v18  ;;  %v211_v53 = vrot.slane %v191_v35, %v862_v18 }
  0x10   :  { %760 = vset.pattern.permute.xlu1 %v770_v3  ;;  %469 = vperm.xlu0 %759, %v839_v7  }
  0x11   :  { %493 = vperm.xlu1 %760, %v839_v7  }
  0x14   :  { %761 = vset.pattern.permute.xlu0 %v769_v2 }
  0x15   :  { %762 = vset.pattern.permute.xlu1 %v771_v4 }
  0x81   :  { %v32_v36 = vpop.permute.xlu0 %31  ;;  %v126_v41 = vpop.permute.xlu1 %125 }
  0x82   :  { %v72_v54 = vmul.f32 %v59_v37, %v32_v36  ;;  %v73_v55 = vmul.f32 %v63_v38, %v32_v36  ;;  %v74_v56 = vmul.f32 %v67_v39, %v32_v36  ;;  %v75_v57 = vmul.f32 %v71_v40, %v32_v36 }
  0x83   :  { %v164_v58 = vmul.f32 %v151_v42, %v126_v41  ;;  %v165_v59 = vmul.f32 %v155_v43, %v126_v41  ;;  %v166_v60 = vmul.f32 %v159_v44, %v126_v41  ;;  %v167_v61 = vmul.f32 %v163_v45, %v126_v41  ;;  %v688_v41 = vld [vmem:[%s1274_s6] sm:$0xff] }
  0x84   :  { %v780_v40 = vmov 5   ;;  %v781_v42 = vmov 4   ;;  %v782_v43 = vmov 6   ;;  %v783_v44 = vmov 7  }
  0x86   :  { %v78_v62 = vpop.permute.xlu0 %77  ;;  %v174_v63 = vpop.permute.xlu1 %173 }
  0x87   :  { %v116_v1 = vmul.f32 %v103_v46, %v78_v62  ;;  %v117_v2 = vmul.f32 %v107_v47, %v78_v62  ;;  %v118_v3 = vmul.f32 %v111_v48, %v78_v62  ;;  %v119_v4 = vmul.f32 %v115_v49, %v78_v62 }
  0x88   :  { %v212_v5 = vmul.f32 %v199_v50, %v174_v63  ;;  %v213_v6 = vmul.f32 %v203_v51, %v174_v63  ;;  %v214_v9 = vmul.f32 %v207_v52, %v174_v63  ;;  %v215_v12 = vmul.f32 %v211_v53, %v174_v63 }
  0x89   :  { %v120_v13 = vadd.f32 %v116_v1, %v72_v54  ;;  %v121_v20 = vadd.f32 %v117_v2, %v73_v55  ;;  %v122_v21 = vadd.f32 %v118_v3, %v74_v56  ;;  %v123_v22 = vadd.f32 %v119_v4, %v75_v57  ;;  %v250_v4 = vld [vmem:[%s1275_s3 + $0x8] sm:$0xff] }
  0x8a   :  { %v955_v62 = vand.u32 127, %v36_v8 }
  0x8b   :  { %v168_v23 = vadd.f32 %v164_v58, %v120_v13  ;;  %v169_v24 = vadd.f32 %v165_v59, %v121_v20  ;;  %v170_v25 = vadd.f32 %v166_v60, %v122_v21  ;;  %v171_v26 = vadd.f32 %v167_v61, %v123_v22  ;;  %v224_v27 = vpop.permute.xlu1 %223  ;;  %v948_v45 = vpop.permute.xlu0 %455  ;;  %v707_v13 = vld [vmem:[%s1275_s3 + $0x28] sm:$0xff]  ;;  %v710_v21 = vld [vmem:[%s1275_s3 + $0x40] sm:$0xff] }
  0x8c   :  { %vm244_vm0 = vcmp.lt.s32.totalorder %v955_v62, 17  ;;  %vm265_vm1 = vcmp.lt.s32.totalorder %v955_v62, 16  ;;  %vm291_vm2 = vcmp.lt.s32.totalorder %v955_v62, 15  ;;  %vm317_vm3 = vcmp.lt.s32.totalorder %v955_v62, 1 }
  0x8d   :  { %v216_v28 = vadd.f32 %v212_v5, %v168_v23  ;;  %v217_v29 = vadd.f32 %v213_v6, %v169_v24  ;;  %v218_v30 = vadd.f32 %v214_v9, %v170_v25  ;;  %v219_v31 = vadd.f32 %v215_v12, %v171_v26  ;;  %v706_v5 = vld [vmem:[%s1275_s3 + $0x20] sm:$0xff]  ;;  %v708_v25 = vld [vmem:[%s1275_s3 + $0x30] sm:$0xff]  ;;  %v709_v26 = vld [vmem:[%s1275_s3 + $0x38] sm:$0xff] }
  0x8e   :  { %v249_v9 = vld [vmem:[%s1275_s3] sm:$0xff]  ;;  %vm356_vm4 = vcmp.lt.s32.totalorder %v955_v62, 127  ;;  %vm382_vm5 = vcmp.lt.s32.totalorder %v955_v62, 113  ;;  %vm408_vm6 = vcmp.lt.s32.totalorder %v955_v62, 112  ;;  %vm434_vm7 = vcmp.lt.s32.totalorder %v955_v62, 111 }
  0x8f   :  { %v226_v32 = vadd.f32 %v224_v27, %v216_v28  ;;  %v227_v33 = vadd.f32 %v224_v27, %v217_v29  ;;  %v228_v34 = vadd.f32 %v224_v27, %v218_v30  ;;  %v229_v35 = vadd.f32 %v224_v27, %v219_v31  ;;  %v952_v47 = vpop.permute.xlu0 %469 }
  0x90   :  { %v950_v46 = vpop.permute.xlu1 %493 }
  0x91   :  { %v898_v36 = vmax.f32 %v226_v32, 0.0  ;;  %v900_v37 = vmax.f32 %v227_v33, 0.0  ;;  %v904_v38 = vmax.f32 %v228_v34, 0.0  ;;  %v906_v39 = vmax.f32 %v229_v35, 0.0  ;;  %v711_v33 = vld [vmem:[%s1275_s3 + $0x48] sm:$0xff]  ;;  %v714_v35 = vld [vmem:[%s1275_s3 + $0x60] sm:$0xff] }
  0x93   :  { %236 = vrot.lane.b32.xlu1 %v900_v37, %s772_s0  ;;  %234 = vrot.lane.b32.xlu0 %v898_v36, %s772_s0 }
  0x97   :  { %240 = vrot.lane.b32.xlu1 %v906_v39, %s772_s0  ;;  %238 = vrot.lane.b32.xlu0 %v904_v38, %s772_s0 }
  0x9b   :  { %259 = vrot.lane.b32.xlu1 %v900_v37, %s773_s9  ;;  %257 = vrot.lane.b32.xlu0 %v898_v36, %s773_s9 }
  0x9f   :  { %263 = vrot.lane.b32.xlu1 %v906_v39, %s773_s9  ;;  %261 = vrot.lane.b32.xlu0 %v904_v38, %s773_s9 }
  0xa3   :  { %285 = vrot.lane.b32.xlu1 %v900_v37, %s774_s10  ;;  %283 = vrot.lane.b32.xlu0 %v898_v36, %s774_s10 }
  0xa7   :  { %289 = vrot.lane.b32.xlu1 %v906_v39, %s774_s10  ;;  %287 = vrot.lane.b32.xlu0 %v904_v38, %s774_s10 }
  0xab   :  { %311 = vrot.lane.b32.xlu1 %v900_v37, %s775_s11  ;;  %309 = vrot.lane.b32.xlu0 %v898_v36, %s775_s11 }
  0xaf   :  { %315 = vrot.lane.b32.xlu1 %v906_v39, %s775_s11  ;;  %313 = vrot.lane.b32.xlu0 %v904_v38, %s775_s11 }
  0xb3   :  { %350 = vrot.lane.b32.xlu1 %v900_v37, %s776_s12  ;;  %348 = vrot.lane.b32.xlu0 %v898_v36, %s776_s12 }
  0xb7   :  { %354 = vrot.lane.b32.xlu1 %v906_v39, %s776_s12  ;;  %352 = vrot.lane.b32.xlu0 %v904_v38, %s776_s12 }
  0xbb   :  { %376 = vrot.lane.b32.xlu1 %v900_v37, %s777_s13  ;;  %374 = vrot.lane.b32.xlu0 %v898_v36, %s777_s13 }
  0xbf   :  { %380 = vrot.lane.b32.xlu1 %v906_v39, %s777_s13  ;;  %378 = vrot.lane.b32.xlu0 %v904_v38, %s777_s13 }
  0xc3   :  { %402 = vrot.lane.b32.xlu1 %v900_v37, %s778_s14  ;;  %400 = vrot.lane.b32.xlu0 %v898_v36, %s778_s14 }
  0xc7   :  { %406 = vrot.lane.b32.xlu1 %v906_v39, %s778_s14  ;;  %404 = vrot.lane.b32.xlu0 %v904_v38, %s778_s14 }
  0xcb   :  { %426 = vrot.lane.b32.xlu1 %v898_v36, %s779_s15  ;;  %430 = vrot.lane.b32.xlu0 %v904_v38, %s779_s15 }
  0xcf   :  { %428 = vrot.lane.b32.xlu1 %v900_v37, %s779_s15  ;;  %521 = vperm.xlu0 %761, %v839_v7  }
  0xd3   :  { %432 = vrot.lane.b32.xlu1 %v906_v39, %s779_s15  ;;  %764 = vset.pattern.permute.xlu0 %v780_v40 }
  0xd4   :  { %605 = vperm.xlu0 %764, %v839_v7  }
  0xd7   :  { %549 = vperm.xlu1 %762, %v839_v7  }
  0xd8   :  { %767 = vset.pattern.permute.xlu0 %v768_v0 }
  0xd9   :  { %691 = vperm.xlu0 %767, %v688_v41  }
  0xdb   :  { %763 = vset.pattern.permute.xlu1 %v781_v42  ;;  %v251_v42 = vld [vmem:[%s1275_s3 + $0x10] sm:$0xff] }
  0xdc   :  { %577 = vperm.xlu1 %763, %v839_v7  }
  0xe0   :  { %765 = vset.pattern.permute.xlu1 %v782_v43  ;;  %v252_v43 = vld [vmem:[%s1275_s3 + $0x18] sm:$0xff] }
  0xe1   :  { %633 = vperm.xlu1 %765, %v839_v7  }
  0xe5   :  { %766 = vset.pattern.permute.xlu1 %v783_v44 }
  0xe6   :  { %661 = vperm.xlu1 %766, %v839_v7  }
 0x105   :  { %v237_v0 = vpop.permute.xlu1 %236  ;;  %v235_v48 = vpop.permute.xlu0 %234 }
 0x106   :  { %v247_v8 = vsel %vm244_vm0, %v235_v48, %v237_v0 }
 0x107   :  { %v254_v23 = vmul.f32 %v250_v4, %v247_v8 }
 0x109   :  { %v241_v49 = vpop.permute.xlu1 %240  ;;  %v239_v50 = vpop.permute.xlu0 %238 }
 0x10a   :  { %v248_v12 = vsel %vm244_vm0, %v241_v49, %v235_v48  ;;  %v245_v31 = vsel %vm244_vm0, %v239_v50, %v241_v49  ;;  %v246_v32 = vsel %vm244_vm0, %v237_v0, %v239_v50  ;;  %v712_v48 = vld [vmem:[%s1275_s3 + $0x50] sm:$0xff] }
 0x10b   :  { %v253_v41 = vmul.f32 %v249_v9, %v248_v12  ;;  %v256_v12 = vmul.f32 %v252_v43, %v245_v31 }
 0x10d   :  { %v260_v51 = vpop.permute.xlu1 %259  ;;  %v258_v52 = vpop.permute.xlu0 %257 }
 0x10e   :  { %v268_v20 = vsel %vm265_vm1, %v258_v52, %v260_v51 }
 0x10f   :  { %v276_v44 = vmul.f32 %v707_v13, %v268_v20 }
 0x111   :  { %v264_v53 = vpop.permute.xlu1 %263  ;;  %v262_v54 = vpop.permute.xlu0 %261 }
 0x112   :  { %v269_v6 = vsel %vm265_vm1, %v264_v53, %v258_v52  ;;  %v266_v27 = vsel %vm265_vm1, %v262_v54, %v264_v53  ;;  %v267_v28 = vsel %vm265_vm1, %v260_v51, %v262_v54  ;;  %v713_v52 = vld [vmem:[%s1275_s3 + $0x58] sm:$0xff]  ;;  %v715_v54 = vld [vmem:[%s1275_s3 + $0x68] sm:$0xff] }
 0x113   :  { %v275_v24 = vmul.f32 %v706_v5, %v269_v6  ;;  %v277_v50 = vmul.f32 %v708_v25, %v267_v28  ;;  %v278_v51 = vmul.f32 %v709_v26, %v266_v27 }
 0x115   :  { %v286_v55 = vpop.permute.xlu1 %285  ;;  %v284_v56 = vpop.permute.xlu0 %283  ;;  %v279_v4 = vadd.f32 %v275_v24, %v253_v41  ;;  %v282_v28 = vadd.f32 %v278_v51, %v256_v12 }
 0x116   :  { %v294_v34 = vsel %vm291_vm2, %v284_v56, %v286_v55 }
 0x117   :  { %v302_v8 = vmul.f32 %v711_v33, %v294_v34 }
 0x119   :  { %v290_v57 = vpop.permute.xlu1 %289  ;;  %v288_v58 = vpop.permute.xlu0 %287 }
 0x11a   :  { %v295_v22 = vsel %vm291_vm2, %v290_v57, %v284_v56  ;;  %v293_v49 = vsel %vm291_vm2, %v286_v55, %v288_v58  ;;  %v292_v53 = vsel %vm291_vm2, %v288_v58, %v290_v57  ;;  %v716_v55 = vld [vmem:[%s1275_s3 + $0x70] sm:$0xff]  ;;  %v255_v58 = vmul.f32 %v251_v42, %v246_v32  ;;  %v722_v42 = vld [vmem:[%s1275_s3 + $0xa0] sm:$0xff] }
 0x11b   :  { %v301_v0 = vmul.f32 %v710_v21, %v295_v22  ;;  %v303_v13 = vmul.f32 %v712_v48, %v293_v49  ;;  %v280_v21 = vadd.f32 %v276_v44, %v254_v23  ;;  %v304_v24 = vmul.f32 %v713_v52, %v292_v53  ;;  %v723_v44 = vld [vmem:[%s1275_s3 + $0xa8] sm:$0xff]  ;;  %v721_v48 = vld [vmem:[%s1275_s3 + $0x98] sm:$0xff]  ;;  %v720_v49 = vld [vmem:[%s1275_s3 + $0x90] sm:$0xff] }
 0x11c   :  { %v281_v26 = vadd.f32 %v277_v50, %v255_v58  ;;  %v725_v53 = vld [vmem:[%s1275_s3 + $0xb8] sm:$0xff]  ;;  %v342_v58 = vmul.f32 %v720_v49, %v904_v38 }
 0x11d   :  { %v312_v59 = vpop.permute.xlu1 %311  ;;  %v310_v7 = vpop.permute.xlu0 %309  ;;  %v305_v22 = vadd.f32 %v301_v0, %v279_v4  ;;  %v306_v31 = vadd.f32 %v302_v8, %v280_v21 }
 0x11e   :  { %v320_v56 = vsel %vm317_vm3, %v310_v7, %v312_v59  ;;  %v307_v34 = vadd.f32 %v303_v13, %v281_v26 }
 0x11f   :  { %v328_v25 = vmul.f32 %v715_v54, %v320_v56  ;;  %v724_v54 = vld [vmem:[%s1275_s3 + $0xb0] sm:$0xff] }
 0x121   :  { %v316_v60 = vpop.permute.xlu1 %315  ;;  %v314_v61 = vpop.permute.xlu0 %313  ;;  %v332_v41 = vadd.f32 %v328_v25, %v306_v31  ;;  %v728_v25 = vld [vmem:[%s1275_s3 + $0xd0] sm:$0xff] }
 0x122   :  { %v321_v40 = vsel %vm317_vm3, %v316_v60, %v310_v7  ;;  %v319_v6 = vsel %vm317_vm3, %v312_v59, %v314_v61  ;;  %v717_v7 = vld [vmem:[%s1275_s3 + $0x78] sm:$0xff]  ;;  %v318_v20 = vsel %vm317_vm3, %v314_v61, %v316_v60  ;;  %v718_v59 = vld [vmem:[%s1275_s3 + $0x80] sm:$0xff]  ;;  %v719_v60 = vld [vmem:[%s1275_s3 + $0x88] sm:$0xff] }
 0x123   :  { %v327_v5 = vmul.f32 %v714_v35, %v321_v40  ;;  %v329_v27 = vmul.f32 %v716_v55, %v319_v6  ;;  %v330_v33 = vmul.f32 %v717_v7, %v318_v20  ;;  %v340_v35 = vmul.f32 %v718_v59, %v898_v36  ;;  %v726_v55 = vld [vmem:[%s1275_s3 + $0xc0] sm:$0xff]  ;;  %v727_v6 = vld [vmem:[%s1275_s3 + $0xc8] sm:$0xff] }
 0x124   :  { %v308_v40 = vadd.f32 %v304_v24, %v282_v28  ;;  %v341_v50 = vmul.f32 %v719_v60, %v900_v37  ;;  %v730_v20 = vld [vmem:[%s1275_s3 + $0xe0] sm:$0xff] }
 0x125   :  { %v957_v63 = vpop.permute.xlu1 %350  ;;  %v959_v1 = vpop.permute.xlu0 %348  ;;  %v331_v32 = vadd.f32 %v327_v5, %v305_v22  ;;  %v333_v0 = vadd.f32 %v329_v27, %v307_v34  ;;  %v729_v22 = vld [vmem:[%s1275_s3 + $0xd8] sm:$0xff]  ;;  %v732_v34 = vld [vmem:[%s1275_s3 + $0xf0] sm:$0xff] }
 0x126   :  { %v359_v43 = vsel %vm356_vm4, %v959_v1, %v957_v63  ;;  %v334_v51 = vadd.f32 %v330_v33, %v308_v40  ;;  %v345_v12 = vadd.f32 %v341_v50, %v332_v41  ;;  %v734_v41 = vld [vmem:[%s1275_s3 + $0x100] sm:$0xff] }
 0x127   :  { %v344_v52 = vadd.f32 %v340_v35, %v331_v32  ;;  %v366_v8 = vmul.f32 %v722_v42, %v359_v43  ;;  %v346_v32 = vadd.f32 %v342_v58, %v333_v0  ;;  %v735_v42 = vld [vmem:[%s1275_s3 + $0x108] sm:$0xff] }
 0x129   :  { %v963_v2 = vpop.permute.xlu1 %354  ;;  %v965_v3 = vpop.permute.xlu0 %352  ;;  %v370_v28 = vadd.f32 %v366_v8, %v344_v52  ;;  %v736_v8 = vld [vmem:[%s1275_s3 + $0x110] sm:$0xff] }
 0x12a   :  { %v358_v36 = vsel %vm356_vm4, %v957_v63, %v965_v3  ;;  %v360_v63 = vsel %vm356_vm4, %v963_v2, %v959_v1  ;;  %v357_v37 = vsel %vm356_vm4, %v965_v3, %v963_v2  ;;  %v343_v3 = vmul.f32 %v721_v48, %v906_v39 }
 0x12b   :  { %v367_v5 = vmul.f32 %v723_v44, %v358_v36  ;;  %v369_v13 = vmul.f32 %v725_v53, %v360_v63  ;;  %v368_v7 = vmul.f32 %v724_v54, %v357_v37 }
 0x12c   :  { %v347_v31 = vadd.f32 %v343_v3, %v334_v51 }
 0x12d   :  { %v1004_v29 = vpop.permute.xlu1 %376  ;;  %v1006_v30 = vpop.permute.xlu0 %374  ;;  %v371_v33 = vadd.f32 %v367_v5, %v345_v12  ;;  %v737_v5 = vld [vmem:[%s1275_s3 + $0x118] sm:$0xff] }
 0x12e   :  { %v385_v1 = vsel %vm382_vm5, %v1006_v30, %v1004_v29  ;;  %v373_v43 = vadd.f32 %v369_v13, %v347_v31 }
 0x12f   :  { %v392_v38 = vmul.f32 %v726_v55, %v385_v1 }
 0x131   :  { %v1048_v9 = vpop.permute.xlu1 %380  ;;  %v1050_v57 = vpop.permute.xlu0 %378  ;;  %v396_v44 = vadd.f32 %v392_v38, %v370_v28 }
 0x132   :  { %v384_v2 = vsel %vm382_vm5, %v1004_v29, %v1050_v57  ;;  %v731_v29 = vld [vmem:[%s1275_s3 + $0xe8] sm:$0xff]  ;;  %v386_v24 = vsel %vm382_vm5, %v1048_v9, %v1006_v30  ;;  %v383_v59 = vsel %vm382_vm5, %v1050_v57, %v1048_v9  ;;  %v733_v30 = vld [vmem:[%s1275_s3 + $0xf8] sm:$0xff] }
 0x133   :  { %v393_v26 = vmul.f32 %v727_v6, %v384_v2  ;;  %v395_v35 = vmul.f32 %v729_v22, %v386_v24  ;;  %v394_v40 = vmul.f32 %v728_v25, %v383_v59 }
 0x135   :  { %v403_v61 = vpop.permute.xlu1 %402  ;;  %v401_v23 = vpop.permute.xlu0 %400  ;;  %v397_v36 = vadd.f32 %v393_v26, %v371_v33 }
 0x136   :  { %v411_v21 = vsel %vm408_vm6, %v401_v23, %v403_v61 }
 0x137   :  { %v418_v60 = vmul.f32 %v730_v20, %v411_v21 }
 0x139   :  { %v407_v56 = vpop.permute.xlu1 %406  ;;  %v405_v4 = vpop.permute.xlu0 %404  ;;  %v422_v53 = vadd.f32 %v418_v60, %v396_v44 }
 0x13a   :  { %v410_v39 = vsel %vm408_vm6, %v403_v61, %v405_v4  ;;  %v412_v61 = vsel %vm408_vm6, %v407_v56, %v401_v23  ;;  %v409_v9 = vsel %vm408_vm6, %v405_v4, %v407_v56  ;;  %v372_v23 = vadd.f32 %v368_v7, %v346_v32 }
 0x13b   :  { %v419_v57 = vmul.f32 %v731_v29, %v410_v39  ;;  %v421_v49 = vmul.f32 %v733_v30, %v412_v61  ;;  %v420_v50 = vmul.f32 %v732_v34, %v409_v9  ;;  %v399_v56 = vadd.f32 %v395_v35, %v373_v43 }
 0x13c   :  { %v398_v4 = vadd.f32 %v394_v40, %v372_v23 }
 0x13d   :  { %v427_v27 = vpop.permute.xlu1 %426  ;;  %v431_v0 = vpop.permute.xlu0 %430  ;;  %v423_v63 = vadd.f32 %v419_v57, %v397_v36  ;;  %v425_v2 = vadd.f32 %v421_v49, %v399_v56 }
 0x13e   :  { %v424_v3 = vadd.f32 %v420_v50, %v398_v4 }
 0x141   :  { %v429_v48 = vpop.permute.xlu1 %428 }
 0x142   :  { %v436_v51 = vsel %vm434_vm7, %v429_v48, %v431_v0  ;;  %v437_v52 = vsel %vm434_vm7, %v427_v27, %v429_v48 }
 0x143   :  { %v444_v54 = vmul.f32 %v734_v41, %v437_v52  ;;  %v445_v37 = vmul.f32 %v735_v42, %v436_v51 }
 0x145   :  { %v448_v55 = vadd.f32 %v444_v54, %v422_v53  ;;  %v449_v1 = vadd.f32 %v445_v37, %v423_v63  ;;  %v433_v6 = vpop.permute.xlu1 %432 }
 0x146   :  { %v435_v58 = vsel %vm434_vm7, %v431_v0, %v433_v6  ;;  %v438_v12 = vsel %vm434_vm7, %v433_v6, %v427_v27 }
 0x147   :  { %v458_v13 = vadd.f32 %v948_v45, %v448_v55  ;;  %v459_v7 = vadd.f32 %v948_v45, %v449_v1  ;;  %v446_v20 = vmul.f32 %v736_v8, %v435_v58  ;;  %v447_v21 = vmul.f32 %v737_v5, %v438_v12 }
 0x149   :  { %v1175_v29 = vmax.f32 %v458_v13, 0.0  ;;  %v1177_v39 = vmax.f32 %v459_v7, 0.0  ;;  %v450_v38 = vadd.f32 %v446_v20, %v424_v3  ;;  %v451_v22 = vadd.f32 %v447_v21, %v425_v2 }
 0x14b   :  { %v460_v24 = vadd.f32 %v948_v45, %v450_v38  ;;  %v461_v25 = vadd.f32 %v948_v45, %v451_v22  ;;  %v479_v62 = vrot.slane %v1177_v39, %v844_v10  ;;  %v503_v59 = vrot.slane %v1177_v39, %v858_v16 }
 0x14c   :  { %v475_v26 = vrot.slane %v1175_v29, %v844_v10  ;;  %v499_v27 = vrot.slane %v1175_v29, %v858_v16  ;;  %v527_v23 = vrot.slane %v1175_v29, %v854_v14  ;;  %v555_v52 = vrot.slane %v1175_v29, %v862_v18 }
 0x14d   :  { %v1189_v28 = vmax.f32 %v460_v24, 0.0  ;;  %v1191_v31 = vmax.f32 %v461_v25, 0.0  ;;  %v489_v30 = vmul.f32 %v479_v62, %v952_v47  ;;  %v513_v61 = vmul.f32 %v503_v59, %v950_v46 }
 0x14e   :  { %v488_v34 = vmul.f32 %v475_v26, %v952_v47  ;;  %v512_v9 = vmul.f32 %v499_v27, %v950_v46  ;;  %v522_v41 = vpop.permute.xlu0 %521  ;;  %v559_v53 = vrot.slane %v1177_v39, %v862_v18  ;;  %v587_v13 = vrot.slane %v1177_v39, %v846_v11 }
 0x14f   :  { %v483_v32 = vrot.slane %v1189_v28, %v844_v10  ;;  %v487_v45 = vrot.slane %v1191_v31, %v844_v10  ;;  %v507_v33 = vrot.slane %v1189_v28, %v858_v16  ;;  %v511_v60 = vrot.slane %v1191_v31, %v858_v16 }
 0x150   :  { %v531_v16 = vrot.slane %v1177_v39, %v854_v14  ;;  %v535_v42 = vrot.slane %v1189_v28, %v854_v14  ;;  %v539_v43 = vrot.slane %v1191_v31, %v854_v14  ;;  %v517_v44 = vadd.f32 %v513_v61, %v489_v30 }
 0x151   :  { %v490_v57 = vmul.f32 %v483_v32, %v952_v47  ;;  %v491_v35 = vmul.f32 %v487_v45, %v952_v47  ;;  %v514_v10 = vmul.f32 %v507_v33, %v950_v46  ;;  %v515_v40 = vmul.f32 %v511_v60, %v950_v46 }
 0x152   :  { %v516_v36 = vadd.f32 %v512_v9, %v488_v34  ;;  %v615_v47 = vrot.slane %v1177_v39, %v860_v17  ;;  %v611_v46 = vrot.slane %v1175_v29, %v860_v17  ;;  %v540_v49 = vmul.f32 %v527_v23, %v522_v41 }
 0x153   :  { %v518_v0 = vadd.f32 %v514_v10, %v490_v57  ;;  %v519_v48 = vadd.f32 %v515_v40, %v491_v35  ;;  %v541_v50 = vmul.f32 %v531_v16, %v522_v41  ;;  %v563_v14 = vrot.slane %v1189_v28, %v862_v18  ;;  %v606_v12 = vpop.permute.xlu0 %605 }
 0x154   :  { %v567_v63 = vrot.slane %v1191_v31, %v862_v18  ;;  %v542_v54 = vmul.f32 %v535_v42, %v522_v41  ;;  %v543_v37 = vmul.f32 %v539_v43, %v522_v41  ;;  %v619_v56 = vrot.slane %v1189_v28, %v860_v17 }
 0x155   :  { %v623_v4 = vrot.slane %v1191_v31, %v860_v17  ;;  %v544_v6 = vadd.f32 %v540_v49, %v516_v36  ;;  %v545_v2 = vadd.f32 %v541_v50, %v517_v44  ;;  %v583_v18 = vrot.slane %v1175_v29, %v846_v11 }
 0x156   :  { %v550_v51 = vpop.permute.xlu1 %549  ;;  %v546_v3 = vadd.f32 %v542_v54, %v518_v0  ;;  %v547_v58 = vadd.f32 %v543_v37, %v519_v48  ;;  %v591_v7 = vrot.slane %v1189_v28, %v846_v11  ;;  %v595_v17 = vrot.slane %v1191_v31, %v846_v11 }
 0x157   :  { %v568_v8 = vmul.f32 %v555_v52, %v550_v51  ;;  %v569_v5 = vmul.f32 %v559_v53, %v550_v51  ;;  %v570_v55 = vmul.f32 %v563_v14, %v550_v51  ;;  %v571_v1 = vmul.f32 %v567_v63, %v550_v51 }
 0x158   :  { %v624_v27 = vmul.f32 %v611_v46, %v606_v12  ;;  %v625_v32 = vmul.f32 %v615_v47, %v606_v12  ;;  %v626_v45 = vmul.f32 %v619_v56, %v606_v12  ;;  %v627_v33 = vmul.f32 %v623_v4, %v606_v12  ;;  %v692_v37 = vpop.permute.xlu0 %691 }
 0x159   :  { %v572_v20 = vadd.f32 %v568_v8, %v544_v6  ;;  %v573_v21 = vadd.f32 %v569_v5, %v545_v2  ;;  %v574_v38 = vadd.f32 %v570_v55, %v546_v3  ;;  %v575_v22 = vadd.f32 %v571_v1, %v547_v58 }
 0x15a   :  { %v639_v11 = vrot.slane %v1175_v29, %v856_v15  ;;  %v643_v9 = vrot.slane %v1177_v39, %v856_v15  ;;  %v647_v57 = vrot.slane %v1189_v28, %v856_v15  ;;  %v651_v35 = vrot.slane %v1191_v31, %v856_v15 }
 0x15b   :  { %v578_v24 = vpop.permute.xlu1 %577  ;;  %v667_v47 = vrot.slane %v1175_v29, %v864_v19  ;;  %v671_v46 = vrot.slane %v1177_v39, %v864_v19  ;;  %v675_v0 = vrot.slane %v1189_v28, %v864_v19  ;;  %v679_v15 = vrot.slane %v1191_v31, %v864_v19 }
 0x15c   :  { %v596_v25 = vmul.f32 %v583_v18, %v578_v24  ;;  %v597_v62 = vmul.f32 %v587_v13, %v578_v24  ;;  %v598_v59 = vmul.f32 %v591_v7, %v578_v24  ;;  %v599_v26 = vmul.f32 %v595_v17, %v578_v24 }
 0x15e   :  { %v600_v60 = vadd.f32 %v596_v25, %v572_v20  ;;  %v601_v30 = vadd.f32 %v597_v62, %v573_v21  ;;  %v602_v61 = vadd.f32 %v598_v59, %v574_v38  ;;  %v603_v34 = vadd.f32 %v599_v26, %v575_v22 }
 0x160   :  { %v634_v10 = vpop.permute.xlu1 %633  ;;  %v629_v40 = vadd.f32 %v625_v32, %v601_v30  ;;  %v630_v41 = vadd.f32 %v626_v45, %v602_v61  ;;  %v631_v16 = vadd.f32 %v627_v33, %v603_v34  ;;  %v628_v42 = vadd.f32 %v624_v27, %v600_v60 }
 0x161   :  { %v652_v43 = vmul.f32 %v639_v11, %v634_v10  ;;  %v653_v23 = vmul.f32 %v643_v9, %v634_v10  ;;  %v654_v44 = vmul.f32 %v647_v57, %v634_v10  ;;  %v655_v36 = vmul.f32 %v651_v35, %v634_v10 }
 0x163   :  { %v657_v49 = vadd.f32 %v653_v23, %v629_v40  ;;  %v658_v50 = vadd.f32 %v654_v44, %v630_v41  ;;  %v659_v51 = vadd.f32 %v655_v36, %v631_v16  ;;  %v656_v52 = vadd.f32 %v652_v43, %v628_v42 }
 0x165   :  { %v662_v48 = vpop.permute.xlu1 %661 }
 0x166   :  { %v680_v53 = vmul.f32 %v667_v47, %v662_v48  ;;  %v681_v14 = vmul.f32 %v671_v46, %v662_v48  ;;  %v682_v63 = vmul.f32 %v675_v0, %v662_v48  ;;  %v683_v54 = vmul.f32 %v679_v15, %v662_v48 }
 0x168   :  { %v685_v29 = vadd.f32 %v681_v14, %v657_v49  ;;  %v686_v56 = vadd.f32 %v682_v63, %v658_v50  ;;  %v687_v4 = vadd.f32 %v683_v54, %v659_v51  ;;  %v684_v39 = vadd.f32 %v680_v53, %v656_v52 }
 0x16a   :  { %v694_v8 = vadd.f32 %v692_v37, %v684_v39  ;;  %v695_v5 = vadd.f32 %v692_v37, %v685_v29  ;;  %v696_v28 = vadd.f32 %v692_v37, %v686_v56  ;;  %v697_v55 = vadd.f32 %v692_v37, %v687_v4 }
 0x16c   :  { %698 = vst [vmem:[%s1276_s7] sm:$0xff] %v694_v8  ;;  %699 = vst [vmem:[%s1276_s7 + $0x8] sm:$0xff] %v695_v5 }
 0x16d   :  { %700 = vst [vmem:[%s1276_s7 + $0x10] sm:$0xff] %v696_v28  ;;  %701 = vst [vmem:[%s1276_s7 + $0x18] sm:$0xff] %v697_v55 }

</bundles_post_ra>
